<compile_context>
chip_gen: v7x
topology: tpu7x:2x2x1
jax: 0.10.0
libtpu: 0.0.40
codegen_flags: <defaults>
</compile_context>

<pallas_src>
import functools
import math

import jax
import jax.numpy as jnp
from jax.experimental import pallas as pl
from jax.experimental.pallas import tpu as pltpu


def _w8a16_kernel(x_ref, w_ref, s_ref, b_ref, o_ref, acc_ref):
    """One (tm, tn) output tile, reduced over the K grid axis.

    x_ref:   (tm, tk) bf16   activation tile
    w_ref:   (tk, tn) int8   weight tile in (K, N) layout
    s_ref:   (1, tn)  f32    per-out-feature scales
    b_ref:   (1, tn)  f32    bias
    o_ref:   (tm, tn) f32    output tile
    acc_ref: (tm, tn) f32    VMEM accumulator (persists across K steps)
    """
    k = pl.program_id(2)

    @pl.when(k == 0)
    def _():
        acc_ref[...] = jnp.zeros_like(acc_ref)

    # Dequant-on-the-fly: int8 -> bf16 is exact (|w| <= 128) and keeps the MXU
    # on the single-pass bf16 x bf16 -> f32 path.
    w = w_ref[...].astype(jnp.bfloat16)
    acc_ref[...] += jnp.dot(x_ref[...], w, preferred_element_type=jnp.float32)

    @pl.when(k == pl.num_programs(2) - 1)
    def _():
        o_ref[...] = (acc_ref[...] * s_ref[...] + b_ref[...]).astype(o_ref.dtype)


def _round_up(v, m):
    return ((v + m - 1) // m) * m


def _choose_tiles(M, N, K):
    tm = min(_round_up(M, 8), 256)      # sublane-aligned rows; big for prefill
    tk = min(_round_up(K, 128), 1024)   # long contiguous DMAs along K
    tn = min(_round_up(N, 128), 512)    # lane-dense output width
    # Megacore (v7x 2xTC): make sure at least one parallel axis has >= 2 blocks.
    if pl.cdiv(M, tm) == 1 and pl.cdiv(N, tn) == 1 and tn >= 256:
        tn = max(128, (tn // 2) // 128 * 128)
    return tm, tn, tk


@functools.partial(jax.jit, static_argnames=("tm", "tn", "tk"))
def _w8a16_matmul_2d(x2d, w_nk, scales, bias, *, tm, tn, tk):
    M, K = x2d.shape
    N = w_nk.shape[0]

    M_pad = _round_up(M, tm)
    N_pad = _round_up(N, tn)
    K_pad = _round_up(K, tk)

    # bf16 activations: halves activation HBM traffic, matches the bf16 MXU path.
    x_b = jnp.pad(x2d.astype(jnp.bfloat16), ((0, M_pad - M), (0, K_pad - K)))
    # (K, N) weight layout: no in-kernel transpose, lane-dense RHS & writeback.
    # TODO(synk): in a real deployment store the int8 weights pre-transposed.
    w_kn = jnp.pad(w_nk.T, ((0, K_pad - K), (0, N_pad - N)))
    s2 = jnp.pad(scales.reshape(1, N).astype(jnp.float32), ((0, 0), (0, N_pad - N)))
    b2 = jnp.pad(bias.reshape(1, N).astype(jnp.float32), ((0, 0), (0, N_pad - N)))

    grid = (M_pad // tm, N_pad // tn, K_pad // tk)

    out = pl.pallas_call(
        _w8a16_kernel,
        out_shape=jax.ShapeDtypeStruct((M_pad, N_pad), jnp.float32),
        grid_spec=pltpu.PrefetchScalarGridSpec(
            num_scalar_prefetch=0,
            grid=grid,
            in_specs=[
                pl.BlockSpec((tm, tk), lambda i, j, k: (i, k)),   # activations
                pl.BlockSpec((tk, tn), lambda i, j, k: (k, j)),   # int8 weights (K, N)
                pl.BlockSpec((1, tn), lambda i, j, k: (0, j)),    # scales
                pl.BlockSpec((1, tn), lambda i, j, k: (0, j)),    # bias
            ],
            out_specs=pl.BlockSpec((tm, tn), lambda i, j, k: (i, j)),
            scratch_shapes=[pltpu.VMEM((tm, tn), jnp.float32)],
        ),
        compiler_params=pltpu.CompilerParams(
            dimension_semantics=("parallel", "parallel", "arbitrary"),
        ),
    )(x_b, w_kn, s2, b2)

    return out[:M, :N]


def w8a16_linear(x, int8_weights, scales, bias=None):
    """x: (..., K); int8_weights: (N, K) int8; scales: (N,); bias: (1, N) or None."""
    *lead, K = x.shape
    N = int8_weights.shape[0]
    M = math.prod(lead) if lead else 1
    if bias is None:
        bias = jnp.zeros((1, N), dtype=jnp.float32)
    tm, tn, tk = _choose_tiles(M, N, K)
    out2d = _w8a16_matmul_2d(
        x.reshape(M, K), int8_weights, scales, bias, tm=tm, tn=tn, tk=tk
    )
    return out2d.reshape(*lead, N).astype(x.dtype)


if __name__ == "__main__":
    key = jax.random.PRNGKey(0)
    k_x, k_w, k_s, k_b = jax.random.split(key, 4)

    # Small shapes consistent with the module: batch=2, seq=8,
    # in_features=256, out_features=256.
    batch, seq = 2, 8
    in_features, out_features = 256, 256

    x = jax.random.normal(k_x, (batch, seq, in_features), dtype=jnp.float32)
    int8_weights = jax.random.randint(
        k_w, (out_features, in_features), minval=-128, maxval=127, dtype=jnp.int8
    )
    scales = jax.random.normal(k_s, (out_features,), dtype=jnp.float32)
    bias = jax.random.normal(k_b, (1, out_features), dtype=jnp.float32)

    out = jax.block_until_ready(w8a16_linear(x, int8_weights, scales, bias))

    # Reference mirroring the kernel's W8A16 numerics (bf16 dequant, f32 accum).
    ref = (
        jnp.einsum(
            "bsk,nk->bsn",
            x.astype(jnp.bfloat16),
            int8_weights.astype(jnp.bfloat16),
            preferred_element_type=jnp.float32,
        )
        * scales
        + bias
    )

    assert out.shape == (batch, seq, out_features)
    assert jnp.allclose(out, ref, rtol=1e-2, atol=1e-2), "mismatch vs bf16 reference"

    # Sanity vs the full-f32 module forward (difference = bf16 activation rounding only).
    ref_f32 = (
        jnp.einsum("bsk,nk->bsn", x, int8_weights.astype(jnp.float32)) * scales + bias
    )
    rel = float(jnp.max(jnp.abs(out - ref_f32)) / jnp.max(jnp.abs(ref_f32)))
    assert rel < 5e-2, f"unexpectedly large deviation from f32 reference: {rel}"

    print("KERNEL_OK")
</pallas_src>

<mosaic_0001>
module attributes {stable_mosaic.version = 11 : i64} {
  func.func @_w8a16_kernel(%arg0: i32, %arg1: i32, %arg2: i32, %arg3: memref<16x256xbf16, #tpu.memory_space<vmem>>, %arg4: memref<256x128xi8, #tpu.memory_space<vmem>>, %arg5: memref<1x128xf32, #tpu.memory_space<vmem>>, %arg6: memref<1x128xf32, #tpu.memory_space<vmem>>, %arg7: memref<16x128xf32, #tpu.memory_space<vmem>>, %arg8: memref<16x128xf32, #tpu.memory_space<vmem>>) attributes {dimension_semantics = [#tpu.dimension_semantics<parallel>, #tpu.dimension_semantics<parallel>, #tpu.dimension_semantics<arbitrary>], iteration_bounds = array<i64: 1, 2, 1>, scalar_prefetch = 0 : i64, scratch_operands = 1 : i64, tpu.core_type = #tpu.core_type<tc>, window_params = [{transform_indices = @transform_0, window_bounds = array<i64: 16, 256>}, {transform_indices = @transform_1, window_bounds = array<i64: 256, 128>}, {transform_indices = @transform_2, window_bounds = array<i64: 1, 128>}, {transform_indices = @transform_3, window_bounds = array<i64: 1, 128>}, {transform_indices = @transform_4, window_bounds = array<i64: 16, 128>}]} {
    %c0_i32 = arith.constant 0 : i32
    %0 = arith.cmpi eq, %arg2, %c0_i32 : i32
    %1 = arith.extui %0 : i1 to i32
    %c0_i32_0 = arith.constant 0 : i32
    %2 = arith.cmpi ne, %1, %c0_i32_0 : i32
    scf.if %2 {
      %cst_10 = arith.constant 0.000000e+00 : f32
      %13 = vector.broadcast %cst_10 : f32 to vector<16x128xf32>
      %c0_11 = arith.constant 0 : index
      %c0_12 = arith.constant 0 : index
      %14 = vector.load %arg8[%c0_11, %c0_12] : memref<16x128xf32, #tpu.memory_space<vmem>>, vector<16x128xf32>
      tpu.vector_store %arg8[%c0_11, %c0_12], %13 {strides = array<i32>} : memref<16x128xf32, #tpu.memory_space<vmem>>, vector<16x128xf32>,
    } else {
    }
    %c0 = arith.constant 0 : index
    %c0_1 = arith.constant 0 : index
    %3 = vector.load %arg4[%c0, %c0_1] : memref<256x128xi8, #tpu.memory_space<vmem>>, vector<256x128xi8>
    %4 = arith.sitofp %3 : vector<256x128xi8> to vector<256x128xbf16>
    %c0_2 = arith.constant 0 : index
    %c0_3 = arith.constant 0 : index
    %5 = vector.load %arg8[%c0_2, %c0_3] : memref<16x128xf32, #tpu.memory_space<vmem>>, vector<16x128xf32>
    %c0_4 = arith.constant 0 : index
    %c0_5 = arith.constant 0 : index
    %6 = vector.load %arg3[%c0_4, %c0_5] : memref<16x256xbf16, #tpu.memory_space<vmem>>, vector<16x256xbf16>
    %cst = arith.constant dense<0.000000e+00> : vector<16x128xf32>
    %7 = tpu.matmul %6, %4, %cst {dimension_numbers = #tpu.dot_dimension_numbers<[1], [0], [0], [1], [0, 0, 1, 1], [], []>} : vector<16x256xbf16>, vector<256x128xbf16>, vector<16x128xf32> -> vector<16x128xf32>
    %8 = arith.addf %5, %7 : vector<16x128xf32>
    %c0_6 = arith.constant 0 : index
    %c0_7 = arith.constant 0 : index
    %9 = vector.load %arg8[%c0_6, %c0_7] : memref<16x128xf32, #tpu.memory_space<vmem>>, vector<16x128xf32>
    tpu.vector_store %arg8[%c0_6, %c0_7], %8 {strides = array<i32>} : memref<16x128xf32, #tpu.memory_space<vmem>>, vector<16x128xf32>,
    %c0_i32_8 = arith.constant 0 : i32
    %10 = arith.cmpi eq, %arg2, %c0_i32_8 : i32
    %11 = arith.extui %10 : i1 to i32
    %c0_i32_9 = arith.constant 0 : i32
    %12 = arith.cmpi ne, %11, %c0_i32_9 : i32
    scf.if %12 {
      %c0_10 = arith.constant 0 : index
      %c0_11 = arith.constant 0 : index
      %13 = vector.load %arg8[%c0_10, %c0_11] : memref<16x128xf32, #tpu.memory_space<vmem>>, vector<16x128xf32>
      %c0_12 = arith.constant 0 : index
      %c0_13 = arith.constant 0 : index
      %14 = vector.load %arg5[%c0_12, %c0_13] : memref<1x128xf32, #tpu.memory_space<vmem>>, vector<1x128xf32>
      %15 = vector.broadcast %14 : vector<1x128xf32> to vector<16x128xf32>
      %16 = arith.mulf %13, %15 : vector<16x128xf32>
      %c0_14 = arith.constant 0 : index
      %c0_15 = arith.constant 0 : index
      %17 = vector.load %arg6[%c0_14, %c0_15] : memref<1x128xf32, #tpu.memory_space<vmem>>, vector<1x128xf32>
      %18 = vector.broadcast %17 : vector<1x128xf32> to vector<16x128xf32>
      %19 = arith.addf %16, %18 : vector<16x128xf32>
      %c0_16 = arith.constant 0 : index
      %c0_17 = arith.constant 0 : index
      %20 = vector.load %arg7[%c0_16, %c0_17] : memref<16x128xf32, #tpu.memory_space<vmem>>, vector<16x128xf32>
      tpu.vector_store %arg7[%c0_16, %c0_17], %19 {strides = array<i32>} : memref<16x128xf32, #tpu.memory_space<vmem>>, vector<16x128xf32>,
    } else {
    }
    return
  }
  func.func @transform_0(%arg0: i32, %arg1: i32, %arg2: i32) -> (i32, i32) {
    %c0_i32 = arith.constant 0 : i32
    return %arg0, %arg2 : i32, i32
  }
  func.func @transform_1(%arg0: i32, %arg1: i32, %arg2: i32) -> (i32, i32) {
    %c0_i32 = arith.constant 0 : i32
    return %arg2, %arg1 : i32, i32
  }
  func.func @transform_2(%arg0: i32, %arg1: i32, %arg2: i32) -> (i32, i32) {
    %c0_i32 = arith.constant 0 : i32
    %c0_i32_0 = arith.constant 0 : i32
    return %c0_i32, %arg1 : i32, i32
  }
  func.func @transform_3(%arg0: i32, %arg1: i32, %arg2: i32) -> (i32, i32) {
    %c0_i32 = arith.constant 0 : i32
    %c0_i32_0 = arith.constant 0 : i32
    return %c0_i32, %arg1 : i32, i32
  }
  func.func @transform_4(%arg0: i32, %arg1: i32, %arg2: i32) -> (i32, i32) {
    %c0_i32 = arith.constant 0 : i32
    return %arg0, %arg1 : i32, i32
  }
}

</mosaic_0001>

<bundles_post_ra>
// kernel: _w8a16_matmul_2d.1
= control target key start
LH: loop header
LB: loop body
LE: loop exit
PB: predicated region body
PF: predicated region fallthrough
CT: control target
= control target key end

     0   :  { %9 = vsyncpa [#allocation5], 0  ;;  %s966_s0 = inlined_call_operand.vmem [shape: bf16[16,256], index: 0, kind: input, shape index: {}]   ;;  %s967_s1 = inlined_call_operand.vmem [shape: s8[256,256], index: 1, kind: input, shape index: {}]   ;;  %s968_s2 = inlined_call_operand.vmem [shape: f32[1,256], index: 2, kind: input, shape index: {}]   ;;  %s969_s3 = inlined_call_operand.vmem [shape: f32[1,256], index: 3, kind: input, shape index: {}]   ;;  %s970_s4 = inlined_call_operand.hbm [shape: f32[16,256], index: 4, kind: output, shape index: {}]  }
   0x1   :  { %11 = vsyncpa [#allocation5 + $0x1], 0  ;;  %s818_s15 = smov 0   ;;  %s820_s16 = smov 0  }
   0x2   :  { %s822_s17 = smov 0   ;;  %s824_s18 = smov 0  }
   0x3   :  { %s826_s19 = smov 0   ;;  %s828_s20 = smov 0  }
   0x4 LB: > { %s608_s21 = sadd.s32 4294967295, %s787_s20   ;;  %s609_s22 = sadd.s32 4294967294, %s787_s20   ;;  %s787_s20 = sphi %s828_s20, %s17_s20   ;;  %s783_s19 = sphi %s826_s19, %s977_s19   ;;  %s779_s18 = sphi %s824_s18, %s976_s18   ;;  %s775_s17 = sphi %s822_s17, %s975_s17   ;;  %s771_s16 = sphi %s820_s16, %s974_s16   ;;  %s767_s15 = sphi %s818_s15, %s973_s15  }
   0x5   : > { %s32_s23 = sadd.s32 1, %s783_s19  ;;  %s73_s24 = sadd.s32 1, %s775_s17 }
   0x6   : > { %p34_p0 = scmp.ge.s32.totalorder %s32_s23, 2  ;;  %p80_p1 = scmp.ne.s32.totalorder %s775_s17, %s771_s16 }
   0x7   : > { %p81_p2 = scmp.eq.s32.totalorder %s787_s20, 0  ;;  %p164_p3 = scmp.eq.s32.totalorder %s608_s21, 1 }
   0x8   : > { %s979_s23 = smov (%p34_p0, %s32_s23), 0  ;;  %p169_p6 = scmp.ne.s32.totalorder %s771_s16, %s767_s15 }
   0x9   : > { %p82_p4 = por %p81_p2, %p80_p1  ;;  %p857_p5 = por %p164_p3, %p80_p1 }
   0xa   : > { %s69_s26 = ssub.s32 %s783_s19, %s979_s23  ;;  %p170_p8 = scmp.eq.s32.totalorder %s609_s22, 1 }
   0xb   : > { %p71_p7 = scmp.eq.s32.totalorder %s69_s26, 0  ;;  %p612_p10 = scmp.ge.s32.totalorder %s787_s20, 2 }
   0xc   : > { %p868_p9 = por %p170_p8, %p169_p6 }
   0xd   : > { %s866_s27 = scalar_select %p71_p7, %s775_s17, %s73_s24  }
   0xe   : > { %201 = sbr.rel (%p612_p10) target bundleno = 29 (0x1d), region = 20 }
  0x15   : > { %204 = sbr.rel (!%p82_p4) target bundleno = 29 (0x1d), region = 24  ;;  %s206_s29 = sand.u32 (%p82_p4), 1, %s775_s17  }
  0x16   : > { %s614_s30 = sshll.u32 (%p82_p4), %s783_s19, 3  ;;  %s613_s5 = sshll.u32 (%p82_p4), %s206_s29, 6 }
  0x17   : > { %s213_s8 = scalar_lea.vmem (%p82_p4), %s967_s1, %s614_s30  ;;  %s208_s9 = scalar_lea.vmem (%p82_p4), [#allocation3], %s613_s5 }
  0x18   : > { %v255_v0 = vld [vmem:[%s213_s8] sm:$0xff] (%p82_p4)  ;;  %v257_v1 = vld [vmem:[%s213_s8 + $0x10] sm:$0xff] (%p82_p4) }
  0x19   : > { %v259_v2 = vld [vmem:[%s213_s8 + $0x20] sm:$0xff] (%p82_p4)  ;;  %256 = vst [vmem:[%s208_s9] sm:$0xff] (%p82_p4), %v255_v0  ;;  %258 = vst [vmem:[%s208_s9 + $0x8] sm:$0xff] (%p82_p4), %v257_v1  ;;  %v261_v3 = vld [vmem:[%s213_s8 + $0x30] sm:$0xff] (%p82_p4) }
  0x1a   : > { %260 = vst [vmem:[%s208_s9 + $0x10] sm:$0xff] (%p82_p4), %v259_v2  ;;  %v263_v4 = vld [vmem:[%s213_s8 + $0x40] sm:$0xff] (%p82_p4)  ;;  %v265_v5 = vld [vmem:[%s213_s8 + $0x50] sm:$0xff] (%p82_p4)  ;;  %262 = vst [vmem:[%s208_s9 + $0x18] sm:$0xff] (%p82_p4), %v261_v3 }
  0x1b   : > { %264 = vst [vmem:[%s208_s9 + $0x20] sm:$0xff] (%p82_p4), %v263_v4  ;;  %266 = vst [vmem:[%s208_s9 + $0x28] sm:$0xff] (%p82_p4), %v265_v5  ;;  %v267_v6 = vld [vmem:[%s213_s8 + $0x60] sm:$0xff] (%p82_p4)  ;;  %v269_v7 = vld [vmem:[%s213_s8 + $0x70] sm:$0xff] (%p82_p4) }
  0x1c   : > { %268 = vst [vmem:[%s208_s9 + $0x30] sm:$0xff] %v267_v6  ;;  %270 = vst [vmem:[%s208_s9 + $0x38] sm:$0xff] %v269_v7 }
  0x1d PF: > { %p615_p11 = scmp.ge.s32.totalorder %s787_s20, 1  ;;  %p287_p12 = scmp.lt.s32.totalorder %s787_s20, 3 }
  0x1f   : > { %p288_p13 = pnand %p615_p11, %p287_p12 }
  0x20   : > { %s883_s10 = sand.u32 (!%p288_p13), 1, %s771_s16   ;;  %v708_v8 = vld [vmem:[%s966_s0 + $0x4] ss:$8 sps:$4 sm:$0xff] (!%p288_p13)   ;;  %v706_v33 = vld [vmem:[%s966_s0] ss:$8 sps:$4 sm:$0xff] (!%p288_p13)   ;;  %p348_p0 = scmp.lt.s32.totalorder (!%p288_p13), %s779_s18, 1 }
  0x21   : > { %291 = sbr.rel (%p288_p13) target bundleno = 307 (0x133), region = 70  ;;  %s616_s11 = sshll.u32 (!%p288_p13), %s883_s10, 6  ;;  %432 = vmatprep.mubr.bf16.mxu0 (!%p288_p13), %v708_v8 }
  0x22   : > { %s889_s14 = scalar_lea.vmem (!%p288_p13), [#allocation3], %s616_s11  ;;  %s617_s26 = sshll.u32 (!%p288_p13), %s883_s10, 4 }
  0x23   : > { %v366_v9 = vld [vmem:[%s889_s14 + $0x20] sm:$0xff] (!%p288_p13)  ;;  %v367_v14 = vld [vmem:[%s889_s14 + $0x28] sm:$0xff] (!%p288_p13)  ;;  %v368_v20 = vld [vmem:[%s889_s14 + $0x30] sm:$0xff] (!%p288_p13)  ;;  %s334_s9 = scalar_lea.vmem (!%p288_p13), [#allocation4], %s617_s26  ;;  %s623_s12 = sshll.u32 (!%p288_p13), %s779_s18, 7 }
  0x24   : > { %v362_v10 = vld [vmem:[%s889_s14] sm:$0xff] (!%p288_p13)  ;;  %v378_v11 = vunpack.c.l.s8.bf16 (!%p288_p13), %v366_v9  ;;  %v379_v12 = vunpack.c.h.s8.bf16 (!%p288_p13), %v366_v9  ;;  %v380_v16 = vunpack.c.l.s8.bf16 (!%p288_p13), %v367_v14  ;;  %v363_v17 = vld [vmem:[%s889_s14 + $0x8] sm:$0xff] (!%p288_p13)  ;;  %v381_v19 = vunpack.c.h.s8.bf16 (!%p288_p13), %v367_v14  ;;  %v364_v23 = vld [vmem:[%s889_s14 + $0x10] sm:$0xff] (!%p288_p13)  ;;  %s486_s11 = sshll.u32 (!%p288_p13), %s334_s9, 4  ;;  %s917_s21 = scalar_lea.hbm (!%p288_p13), %s970_s4, %s623_s12  ;;  %s912_s11 = int_to_ptr.vmem [resolvable:$true] %s486_s11 }
  0x25   : > { %v370_v13 = vunpack.c.l.s8.bf16 (!%p288_p13), %v362_v10  ;;  %v371_v15 = vunpack.c.h.s8.bf16 (!%p288_p13), %v362_v10  ;;  %v372_v18 = vunpack.c.l.s8.bf16 (!%p288_p13), %v363_v17  ;;  %v373_v21 = vunpack.c.h.s8.bf16 (!%p288_p13), %v363_v17  ;;  %v369_v26 = vld [vmem:[%s889_s14 + $0x38] sm:$0xff] (!%p288_p13)  ;;  %s471_s22 = scalar_lea.sflag (!%p288_p13), [#allocation5], %s883_s10 }
  0x26   : > { %626 = vmatprep.subr.bf16.mxu0 (!%p288_p13), %v378_v11  ;;  %v382_v22 = vunpack.c.l.s8.bf16 (!%p288_p13), %v368_v20  ;;  %v374_v24 = vunpack.c.l.s8.bf16 (!%p288_p13), %v364_v23  ;;  %v383_v25 = vunpack.c.h.s8.bf16 (!%p288_p13), %v368_v20  ;;  %v375_v27 = vunpack.c.h.s8.bf16 (!%p288_p13), %v364_v23  ;;  %v365_v29 = vld [vmem:[%s889_s14 + $0x18] sm:$0xff] (!%p288_p13) }
  0x27   : > { %627 = vmatpush3.bf16.msra.mxu0 (!%p288_p13), %v370_v13  ;;  %v384_v28 = vunpack.c.l.s8.bf16 (!%p288_p13), %v369_v26  ;;  %v376_v30 = vunpack.c.l.s8.bf16 (!%p288_p13), %v365_v29  ;;  %v385_v31 = vunpack.c.h.s8.bf16 (!%p288_p13), %v369_v26  ;;  %v377_v32 = vunpack.c.h.s8.bf16 (!%p288_p13), %v365_v29 }
  0x28   : > { %628 = vmatprep.subr.bf16.mxu0 %v379_v12  ;;  %s349_s24 = scalar_select %p348_p0, %s779_s18, 1 }
  0x29   : > { %s789_s18 = smov [#allocation4]  }
  0x2a   : > { %s350_s5 = scalar_lea.vmem %s968_s2, %s349_s24  ;;  %s353_s8 = scalar_lea.vmem %s969_s3, %s349_s24 }
  0x2b   : > { %629 = vmatpush3.bf16.msra.mxu0 %v371_v15  ;;  %v620_v36 = vld [vmem:[%s350_s5] ss:$0 sm:$0xff]  ;;  %s709_s24 = scalar_lea.vmem %s912_s11, 256  ;;  %s713_s26 = sshll.u32 %s789_s18, 4  ;;  %s714_s26 = int_to_ptr.vmem [resolvable:$false] %s713_s26 }
  0x2c   : > { %630 = vmatprep.subr.bf16.mxu0 %v380_v16  ;;  %v621_v39 = vld [vmem:[%s353_s8] ss:$0 sm:$0xff]  ;;  %p710_p1 = scmp.ne.s32.totalorder %s912_s11, %s709_s24  ;;  %s715_s29 = scalar_lea.vmem %s714_s26, 512 }
  0x2d   : > { %p716_p4 = scmp.lt.s32.totalorder %s912_s11, %s714_s26  ;;  %p717_p6 = scmp.lt.s32.totalorder %s715_s29, %s709_s24 }
  0x2e   : > { %p711_p2 = pnand %p710_p1, %p857_p5 }
  0x2f   : > { %631 = vmatpush3.bf16.msra.mxu0 %v372_v18  ;;  %p718_p7 = por %p717_p6, %p716_p4 }
  0x30   : > { %632 = vmatprep.subr.bf16.mxu0 %v381_v19  ;;  %p712_p3 = pneg %p711_p2 }
  0x32   : > { %p719_p8 = pnand %p718_p7, %p712_p3 }
  0x33   : > { %633 = vmatpush3.bf16.msra.mxu0 %v373_v21 }
  0x34   : > { %634 = vmatprep.subr.bf16.mxu0 %v382_v22 }
  0x37   : > { %635 = vmatpush3.bf16.msra.mxu0 %v374_v24 }
  0x38   : > { %636 = vmatprep.subr.bf16.mxu0 %v383_v25 }
  0x3b   : > { %637 = vmatpush3.bf16.msra.mxu0 %v375_v27 }
  0x3c   : > { %638 = vmatprep.subr.bf16.mxu0 %v384_v28 }
  0x3f   : > { %639 = vmatpush3.bf16.msra.mxu0 %v376_v30 }
  0x40   : > { %640 = vmatprep.subr.bf16.mxu0 %v385_v31 }
  0x43   : > { %641 = vmatpush3.bf16.msra.mxu0 %v377_v32 }
  0x46   : > { %433 = vmatmul.mubr.bf16.vlgmr.msra.gmra.mrb[0].mxu0 %v706_v33 }
 0x119   : > { %v642_v34 = vpop.f32.mrb[0].mxu0 }
 0x11a   : > { %v643_v35 = vpop.f32.mrb[1].mxu0 }
 0x11b   : > { %v644_v37 = vadd.f32 %v643_v35, %v642_v34  ;;  %v645_v38 = vpop.f32.mrb[2].mxu0 }
 0x11c   : > { %v646_v40 = vpop.f32.mrb[3].mxu0 }
 0x11d   : > { %v457_v41 = vmul.f32 %v644_v37, %v620_v36  ;;  %v647_v42 = vadd.f32 %v646_v40, %v645_v38 }
 0x11f   : > { %v466_v43 = vadd.f32 %v621_v39, %v457_v41  ;;  %v458_v44 = vmul.f32 %v647_v42, %v620_v36 }
 0x121   : > { %468 = vst [vmem:[%s334_s9] sm:$0xff] %v466_v43  ;;  %v467_v45 = vadd.f32 %v621_v39, %v458_v44 }
 0x123   : > { %469 = vst [vmem:[%s334_s9 + $0x8] sm:$0xff] %v467_v45 }
 0x124   : > { %722 = shalt.err (!%p719_p8)
}
 0x125   : > { %s723_s30 = scalar_lea.hbm %s917_s21, 256  ;;  %s727_s7 = scalar_lea.hbm %s970_s4, 512 }
 0x126   : > { %p724_p11 = scmp.ne.s32.totalorder %s917_s21, %s723_s30  ;;  %p728_p0 = scmp.lt.u32.totalorder %s917_s21, %s970_s4 }
 0x127   : > { %p729_p1 = scmp.lt.u32.totalorder %s727_s7, %s723_s30  ;;  %p731_p3 = scmp.lt.u32.totalorder %s723_s30, %s917_s21 }
 0x128   : > { %p725_p12 = pnand %p724_p11, %p857_p5 }
 0x129   : > { %p730_p2 = por %p729_p1, %p728_p0 }
 0x12a   : > { %p726_p13 = pneg %p725_p12 }
 0x12b   : > { %p732_p4 = por %p731_p3, %p730_p2 }
 0x12d   : > { %p733_p6 = pnand %p732_p4, %p726_p13 }
 0x12f   : > { %736 = shalt.err (!%p733_p6)
}
 0x130   : > { %s790_s12 = smov 128   ;;  %s791_s13 = smov 256  }
 0x131   : > { %s792_s14 = smov 8  }
 0x132   : > { %648 = dma.vmem_to_hbm [thread:$0]  (%p857_p5), %s912_s11, 256, %s917_s21, %s471_s22, %s790_s12, %s791_s13, %s792_s14  }
 0x133 PF: > { %s501_s24 = sand.u32 1, %s767_s15   ;;  %p651_p7 = pnand %p612_p10, %p868_p9 }
 0x134   : > { %s502_s18 = scalar_lea.sflag [#allocation5], %s501_s24 }
 0x135   : > { %762 = dma.done.wait (!%p651_p7), %s502_s18, 256  }
 0x136   : > { %764 = vsyncadd (!%p651_p7), %s502_s18, 4294967040  ;;  %s17_s20 = sadd.s32 1, %s787_s20   ;;  %s973_s15 = smov %s771_s16 }
 0x137   : > { %p14_p8 = scmp.ge.s32.totalorder %s17_s20, 4   ;;  %s974_s16 = smov %s775_s17 }
 0x138   : > { %s975_s17 = smov %s866_s27  ;;  %s976_s18 = smov %s783_s19 }
 0x139   : > { %s977_s19 = smov %s979_s23  ;;  %16 = sbr.rel (!%p14_p8) target bundleno = 4 (0x4), region = 131 }
 0x140   :  { %507 = vsyncpa [#allocation5], 1 }
 0x141   :  { %509 = vsyncpa [#allocation5 + $0x1], 1 }

</bundles_post_ra>
